<compile_context>
chip_gen: v7x
topology: tpu7x:2x2x1
jax: 0.10.0
libtpu: 0.0.40
codegen_flags: <defaults>
</compile_context>

<pallas_src>
import jax
import jax.numpy as jnp
from jax.experimental import pallas as pl
from jax.experimental.pallas import tpu as pltpu

_INV_SQRT2 = 0.7071067811865476
_SQRT_2_OVER_PI = 0.7978845608028654


def _round_up(x, m):
    return (x + m - 1) // m * m


def _vmem_capacity_bytes():
    try:
        info = pltpu.get_tpu_info()
        cap = getattr(info, "vmem_capacity_bytes", None)
        if cap:
            return int(cap)
    except Exception:
        pass
    return 64 << 20  # conservative (v7x-sized) fallback


def _gelu(h, approximate):
    if approximate:
        # tanh approximation: transcendental lands on the EUP slot (v5e relief).
        return 0.5 * h * (1.0 + jnp.tanh(_SQRT_2_OVER_PI * (h + 0.044715 * h * h * h)))
    # Exact erf-based GELU: matches torch.nn.GELU() default.
    return 0.5 * h * (1.0 + jax.lax.erf(h * _INV_SQRT2))


def _make_resident_kernel(mxu_dtype, approximate_gelu):
    # Weights fully resident in VMEM (constant index_maps); single token-tile axis.
    def kernel(x_ref, w1_ref, b1_ref, w2_ref, b2_ref, o_ref):
        x = x_ref[...].astype(mxu_dtype)
        h = jnp.dot(x, w1_ref[...], preferred_element_type=jnp.float32)
        h = _gelu(h + b1_ref[...], approximate_gelu)
        # Dropout(p=0.0) is the identity.
        # TODO(synk): for p > 0 in training mode, add pltpu.prng_random_bits masking.
        out = jnp.dot(h.astype(mxu_dtype), w2_ref[...], preferred_element_type=jnp.float32)
        o_ref[...] = (out + b2_ref[...]).astype(o_ref.dtype)
    return kernel


def _make_stream_kernel_accout(mxu_dtype, approximate_gelu):
    # Hidden-dim streamed; f32 output accumulated directly in o_ref (no scratch).
    def kernel(x_ref, w1_ref, b1_ref, w2_ref, b2_ref, o_ref):
        j = pl.program_id(1)
        x = x_ref[...].astype(mxu_dtype)
        h = jnp.dot(x, w1_ref[...], preferred_element_type=jnp.float32)
        h = _gelu(h + b1_ref[...], approximate_gelu)
        part = jnp.dot(h.astype(mxu_dtype), w2_ref[...], preferred_element_type=jnp.float32)

        @pl.when(j == 0)
        def _init():
            o_ref[...] = part

        @pl.when(j > 0)
        def _acc():
            o_ref[...] += part

        @pl.when(j == pl.num_programs(1) - 1)
        def _fin():
            o_ref[...] += b2_ref[...]
    return kernel


def _make_stream_kernel_scratch(mxu_dtype, approximate_gelu):
    # Hidden-dim streamed; f32 accumulator scratch, finalize-cast to out dtype.
    def kernel(x_ref, w1_ref, b1_ref, w2_ref, b2_ref, o_ref, acc_ref):
        j = pl.program_id(1)
        x = x_ref[...].astype(mxu_dtype)
        h = jnp.dot(x, w1_ref[...], preferred_element_type=jnp.float32)
        h = _gelu(h + b1_ref[...], approximate_gelu)
        part = jnp.dot(h.astype(mxu_dtype), w2_ref[...], preferred_element_type=jnp.float32)

        @pl.when(j == 0)
        def _init():
            acc_ref[...] = part

        @pl.when(j > 0)
        def _acc():
            acc_ref[...] += part

        @pl.when(j == pl.num_programs(1) - 1)
        def _fin():
            o_ref[...] = (acc_ref[...] + b2_ref[...]).astype(o_ref.dtype)
    return kernel


def make_feed_forward(w1, b1, w2, b2, *, mxu_dtype=jnp.bfloat16, tm=None, th=None,
                      approximate_gelu=False, out_dtype=None, force_stream=False):
    """Prepare (pad + cast) the FFN weights ONCE and return apply(x)->(B,S,E).

    Weights are stored as (in_dim, out_dim): the kernel computes x @ W + b
    (equivalent to PyTorch's x @ W_pt.T + b).
    mxu_dtype: MXU operand dtype (bf16 default; f32 accumulation regardless).
    """
    E, H = w1.shape
    assert w2.shape == (H, E) and b1.shape == (H,) and b2.shape == (E,)

    vmem_cap = _vmem_capacity_bytes()
    budget = (vmem_cap * 3) // 4          # leave headroom for compiler scratch
    big_vmem = vmem_cap >= (96 << 20)     # v5e/v6e: 128 MiB;  v7x: 64 MiB
    if tm is None:
        tm = 1024 if big_vmem else 512
    if th is None:
        th = 1024 if big_vmem else 512

    E_pad = _round_up(E, 128)
    wb = jnp.dtype(mxu_dtype).itemsize

    # Keep the streamed weight blocks (double-buffered W1 col + W2 row) well
    # inside the budget even before tm is chosen.
    th = min(_round_up(th, 128), _round_up(H, 128))
    while th > 128 and 4 * E_pad * th * wb > budget // 2:
        th //= 2
    th = max(128, _round_up(th, 128))
    H_pad = _round_up(H, th)
    num_h = H_pad // th

    # ---- one-time weight preparation (hoisted out of the per-call path) -------
    w1_p = jnp.pad(w1, ((0, E_pad - E), (0, H_pad - H))).astype(mxu_dtype)
    w2_p = jnp.pad(w2, ((0, H_pad - H), (0, E_pad - E))).astype(mxu_dtype)
    b1_p = jnp.pad(b1, (0, H_pad - H)).reshape(1, H_pad).astype(jnp.float32)
    b2_p = jnp.pad(b2, (0, E_pad - E)).reshape(1, E_pad).astype(jnp.float32)

    def apply(x):
        B, S, Ex = x.shape
        assert Ex == E
        M = B * S
        odt = out_dtype or x.dtype
        xb = jnp.dtype(x.dtype).itemsize
        ob = jnp.dtype(odt).itemsize
        acc_in_out = jnp.dtype(odt) == jnp.dtype(jnp.float32)

        # bf16 (or other 16-bit) tiles need 16-row sublane multiples.
        sub = 16 if (xb < 4 or ob < 4) else 8

        def stream_need(t):
            need = (2 * t * E_pad * xb            # x tile (double buffered)
                    + 2 * t * E_pad * ob          # out tile (double buffered)
                    + 2 * E_pad * th * wb         # W1 column block (double buffered)
                    + 2 * th * E_pad * wb         # W2 row block (double buffered)
                    + 4 * (th + E_pad) * 4        # biases
                    + 2 * t * th * 4              # f32 GELU intermediate (+ cast copy)
                    + t * E_pad * 4)              # f32 partial
            if not acc_in_out:
                need += t * E_pad * 4             # f32 accumulator scratch
            return need

        def resident_need(t):
            return (2 * t * E_pad * xb
                    + 2 * t * E_pad * ob
                    + 4 * E_pad * H_pad * wb      # W1 + W2 (pipeline allocates 2x)
                    + 4 * (H_pad + E_pad) * 4     # biases
                    + 2 * t * H_pad * 4           # f32 intermediate (+ cast copy)
                    + t * E_pad * 4)              # f32 result tile

        # Token tile: shrink for tiny M, then shrink further if VMEM-tight.
        tm_eff = max(sub, min(tm, _round_up(M, sub)))
        while tm_eff > sub and stream_need(tm_eff) > budget:
            tm_eff = max(sub, _round_up(tm_eff // 2, sub))

        use_resident = (not force_stream) and resident_need(tm_eff) <= budget

        M_pad = _round_up(M, tm_eff)
        num_m = M_pad // tm_eff

        # ---- activations: pad/cast only when actually needed (no-op otherwise) -
        x2d = x.reshape(M, E)
        if M_pad != M or E_pad != E:
            x_p = jnp.pad(x2d, ((0, M_pad - M), (0, E_pad - E)))
        else:
            x_p = x2d

        # ---- VMEM limit from the real need + ~20% headroom, per generation ----
        need = resident_need(tm_eff) if use_resident else stream_need(tm_eff)
        vmem_upper = min(int(vmem_cap * 0.85), 100 << 20)
        vmem_limit = int(min(vmem_upper, max(need + need // 5, 32 << 20)))

        # ---- advisory cost estimate -------------------------------------------
        weight_bytes = 2 * E_pad * H_pad * wb + (H_pad + E_pad) * 4
        cost = pl.CostEstimate(
            flops=4 * M_pad * E_pad * H_pad,
            transcendentals=M_pad * H_pad,
            bytes_accessed=M_pad * E_pad * (xb + ob)
            + (1 if use_resident else num_m) * weight_bytes,
        )

        if use_resident:
            kernel = _make_resident_kernel(mxu_dtype, approximate_gelu)
            grid_spec = pltpu.PrefetchScalarGridSpec(
                num_scalar_prefetch=0,
                grid=(num_m,),
                in_specs=[
                    pl.BlockSpec((tm_eff, E_pad), lambda i: (i, 0)),   # x tile
                    pl.BlockSpec((E_pad, H_pad), lambda i: (0, 0)),    # W1 (resident)
                    pl.BlockSpec((1, H_pad), lambda i: (0, 0)),        # b1
                    pl.BlockSpec((H_pad, E_pad), lambda i: (0, 0)),    # W2 (resident)
                    pl.BlockSpec((1, E_pad), lambda i: (0, 0)),        # b2
                ],
                out_specs=pl.BlockSpec((tm_eff, E_pad), lambda i: (i, 0)),
                scratch_shapes=[],
            )
            dims = ("parallel",)
        else:
            if acc_in_out:
                kernel = _make_stream_kernel_accout(mxu_dtype, approximate_gelu)
                scratch = []
            else:
                kernel = _make_stream_kernel_scratch(mxu_dtype, approximate_gelu)
                scratch = [pltpu.VMEM((tm_eff, E_pad), jnp.float32)]
            grid_spec = pltpu.PrefetchScalarGridSpec(
                num_scalar_prefetch=0,
                grid=(num_m, num_h),
                in_specs=[
                    pl.BlockSpec((tm_eff, E_pad), lambda i, j: (i, 0)),  # x tile
                    pl.BlockSpec((E_pad, th), lambda i, j: (0, j)),      # W1 col block
                    pl.BlockSpec((1, th), lambda i, j: (0, j)),          # b1 block
                    pl.BlockSpec((th, E_pad), lambda i, j: (j, 0)),      # W2 row block
                    pl.BlockSpec((1, E_pad), lambda i, j: (0, 0)),       # b2
                ],
                out_specs=pl.BlockSpec((tm_eff, E_pad), lambda i, j: (i, 0)),
                scratch_shapes=scratch,
            )
            dims = ("parallel", "arbitrary")

        out_p = pl.pallas_call(
            kernel,
            out_shape=jax.ShapeDtypeStruct((M_pad, E_pad), odt),
            grid_spec=grid_spec,
            compiler_params=pltpu.CompilerParams(
                dimension_semantics=dims,
                vmem_limit_bytes=vmem_limit,
            ),
            cost_estimate=cost,
        )(x_p, w1_p, b1_p, w2_p, b2_p)

        if M_pad != M or E_pad != E:
            out_p = out_p[:M, :E]
        return out_p.reshape(B, S, E)

    return apply


def feed_forward(x, w1, b1, w2, b2, **kwargs):
    """One-shot convenience wrapper (weight prep NOT hoisted; prefer
    make_feed_forward + apply in real usage)."""
    return make_feed_forward(w1, b1, w2, b2, **kwargs)(x)


if __name__ == "__main__":
    def ref_ffn(x, w1, b1, w2, b2):
        B_, S_, E_ = x.shape
        h = x.reshape(B_ * S_, E_).astype(jnp.float32) @ w1 + b1
        h = 0.5 * h * (1.0 + jax.lax.erf(h * _INV_SQRT2))
        return (h @ w2 + b2).reshape(B_, S_, E_)

    # Small shapes consistent with the module (emb_dim=64, mult=4 -> hidden=256).
    B, S, E, MULT = 2, 8, 64, 4
    H = E * MULT
    key = jax.random.PRNGKey(0)
    kx, kw1, kb1, kw2, kb2 = jax.random.split(key, 5)
    x = jax.random.normal(kx, (B, S, E), dtype=jnp.float32)
    w1 = jax.random.normal(kw1, (E, H), dtype=jnp.float32) * (1.0 / jnp.sqrt(E))
    b1 = jax.random.normal(kb1, (H,), dtype=jnp.float32) * 0.01
    w2 = jax.random.normal(kw2, (H, E), dtype=jnp.float32) * (1.0 / jnp.sqrt(H))
    b2 = jax.random.normal(kb2, (E,), dtype=jnp.float32) * 0.01
    ref = ref_ffn(x, w1, b1, w2, b2)

    # Case 1: default fast path (bf16 MXU operands, f32 accumulation, weights
    # prepared once via make_feed_forward; weight-resident variant for this size).
    ffn = make_feed_forward(w1, b1, w2, b2)
    out = ffn(x)
    jax.block_until_ready(out)
    assert out.shape == ref.shape
    assert jnp.allclose(out, ref, atol=5e-2, rtol=5e-2), "bf16 resident path mismatch"

    # Case 2: bit-exact f32 MXU path.
    out_f32 = feed_forward(x, w1, b1, w2, b2, mxu_dtype=jnp.float32)
    jax.block_until_ready(out_f32)
    assert jnp.allclose(out_f32, ref, atol=1e-4, rtol=1e-4), "f32 path mismatch"

    # Case 3: hidden-dim streamed variant, f32 output accumulated directly in o_ref.
    ffn_stream = make_feed_forward(w1, b1, w2, b2, force_stream=True, th=128)
    out_s = ffn_stream(x)
    jax.block_until_ready(out_s)
    assert jnp.allclose(out_s, ref, atol=5e-2, rtol=5e-2), "streamed acc-in-out mismatch"

    # Case 4: streamed variant with bf16 output (f32 accumulator scratch path).
    ffn_sb = make_feed_forward(w1, b1, w2, b2, force_stream=True, th=128,
                               out_dtype=jnp.bfloat16)
    out_sb = ffn_sb(x)
    jax.block_until_ready(out_sb)
    assert jnp.allclose(out_sb.astype(jnp.float32), ref, atol=1e-1, rtol=5e-2), \
        "streamed scratch/bf16-out mismatch"

    # Case 5: ragged token count + non-128-multiple dims (pad / remainder path),
    # checked with the exact f32 path.
    B2, S2, E2, H2 = 2, 13, 40, 160
    k2 = jax.random.split(jax.random.PRNGKey(0), 5)
    x2 = jax.random.normal(k2[0], (B2, S2, E2), dtype=jnp.float32)
    w1b = jax.random.normal(k2[1], (E2, H2), dtype=jnp.float32) * (1.0 / jnp.sqrt(E2))
    b1b = jax.random.normal(k2[2], (H2,), dtype=jnp.float32) * 0.01
    w2b = jax.random.normal(k2[3], (H2, E2), dtype=jnp.float32) * (1.0 / jnp.sqrt(H2))
    b2b = jax.random.normal(k2[4], (E2,), dtype=jnp.float32) * 0.01
    out2 = feed_forward(x2, w1b, b1b, w2b, b2b, mxu_dtype=jnp.float32)
    jax.block_until_ready(out2)
    ref2 = ref_ffn(x2, w1b, b1b, w2b, b2b)
    assert jnp.allclose(out2, ref2, atol=1e-4, rtol=1e-4), "ragged/pad path mismatch"

    print("KERNEL_OK")
</pallas_src>

<mosaic_0001>
module attributes {stable_mosaic.version = 11 : i64} {
  func.func @kernel(%arg0: i32, %arg1: memref<16x128xf32, #tpu.memory_space<vmem>>, %arg2: memref<128x256xbf16, #tpu.memory_space<vmem>>, %arg3: memref<1x256xf32, #tpu.memory_space<vmem>>, %arg4: memref<256x128xbf16, #tpu.memory_space<vmem>>, %arg5: memref<1x128xf32, #tpu.memory_space<vmem>>, %arg6: memref<16x128xf32, #tpu.memory_space<vmem>>) attributes {dimension_semantics = [#tpu.dimension_semantics<parallel>], iteration_bounds = array<i64: 1>, scalar_prefetch = 0 : i64, scratch_operands = 0 : i64, tpu.core_type = #tpu.core_type<tc>, window_params = [{transform_indices = @transform_0, window_bounds = array<i64: 16, 128>}, {pipeline_mode = #tpu.pipeline_mode<synchronous>, transform_indices = @transform_1, window_bounds = array<i64: 128, 256>}, {pipeline_mode = #tpu.pipeline_mode<synchronous>, transform_indices = @transform_2, window_bounds = array<i64: 1, 256>}, {pipeline_mode = #tpu.pipeline_mode<synchronous>, transform_indices = @transform_3, window_bounds = array<i64: 256, 128>}, {pipeline_mode = #tpu.pipeline_mode<synchronous>, transform_indices = @transform_4, window_bounds = array<i64: 1, 128>}, {transform_indices = @transform_5, window_bounds = array<i64: 16, 128>}]} {
    %c0 = arith.constant 0 : index
    %c0_0 = arith.constant 0 : index
    %0 = vector.load %arg1[%c0, %c0_0] : memref<16x128xf32, #tpu.memory_space<vmem>>, vector<16x128xf32>
    %1 = arith.truncf %0 : vector<16x128xf32> to vector<16x128xbf16>
    %c0_1 = arith.constant 0 : index
    %c0_2 = arith.constant 0 : index
    %2 = vector.load %arg2[%c0_1, %c0_2] : memref<128x256xbf16, #tpu.memory_space<vmem>>, vector<128x256xbf16>
    %cst = arith.constant dense<0.000000e+00> : vector<16x256xf32>
    %3 = tpu.matmul %1, %2, %cst {dimension_numbers = #tpu.dot_dimension_numbers<[1], [0], [0], [1], [0, 0, 1, 1], [], []>} : vector<16x128xbf16>, vector<128x256xbf16>, vector<16x256xf32> -> vector<16x256xf32>
    %c0_3 = arith.constant 0 : index
    %c0_4 = arith.constant 0 : index
    %4 = vector.load %arg3[%c0_3, %c0_4] : memref<1x256xf32, #tpu.memory_space<vmem>>, vector<1x256xf32>
    %5 = vector.broadcast %4 : vector<1x256xf32> to vector<16x256xf32>
    %6 = arith.addf %3, %5 : vector<16x256xf32>
    %cst_5 = arith.constant 5.000000e-01 : f32
    %7 = vector.broadcast %cst_5 : f32 to vector<16x256xf32>
    %8 = arith.mulf %7, %6 : vector<16x256xf32>
    %cst_6 = arith.constant 0.707106769 : f32
    %9 = vector.broadcast %cst_6 : f32 to vector<16x256xf32>
    %10 = arith.mulf %6, %9 : vector<16x256xf32>
    %11 = math.erf %10 : vector<16x256xf32>
    %cst_7 = arith.constant 1.000000e+00 : f32
    %12 = vector.broadcast %cst_7 : f32 to vector<16x256xf32>
    %13 = arith.addf %12, %11 : vector<16x256xf32>
    %14 = arith.mulf %8, %13 : vector<16x256xf32>
    %15 = arith.truncf %14 : vector<16x256xf32> to vector<16x256xbf16>
    %c0_8 = arith.constant 0 : index
    %c0_9 = arith.constant 0 : index
    %16 = vector.load %arg4[%c0_8, %c0_9] : memref<256x128xbf16, #tpu.memory_space<vmem>>, vector<256x128xbf16>
    %cst_10 = arith.constant dense<0.000000e+00> : vector<16x128xf32>
    %17 = tpu.matmul %15, %16, %cst_10 {dimension_numbers = #tpu.dot_dimension_numbers<[1], [0], [0], [1], [0, 0, 1, 1], [], []>} : vector<16x256xbf16>, vector<256x128xbf16>, vector<16x128xf32> -> vector<16x128xf32>
    %c0_11 = arith.constant 0 : index
    %c0_12 = arith.constant 0 : index
    %18 = vector.load %arg5[%c0_11, %c0_12] : memref<1x128xf32, #tpu.memory_space<vmem>>, vector<1x128xf32>
    %19 = vector.broadcast %18 : vector<1x128xf32> to vector<16x128xf32>
    %20 = arith.addf %17, %19 : vector<16x128xf32>
    %c0_13 = arith.constant 0 : index
    %c0_14 = arith.constant 0 : index
    %21 = vector.load %arg6[%c0_13, %c0_14] : memref<16x128xf32, #tpu.memory_space<vmem>>, vector<16x128xf32>
    tpu.vector_store %arg6[%c0_13, %c0_14], %20 {strides = array<i32>} : memref<16x128xf32, #tpu.memory_space<vmem>>, vector<16x128xf32>,
    return
  }
  func.func @transform_0(%arg0: i32) -> (i32, i32) {
    %c0_i32 = arith.constant 0 : i32
    %c0_i32_0 = arith.constant 0 : i32
    return %arg0, %c0_i32 : i32, i32
  }
  func.func @transform_1(%arg0: i32) -> (i32, i32) {
    %c0_i32 = arith.constant 0 : i32
    %c0_i32_0 = arith.constant 0 : i32
    %c0_i32_1 = arith.constant 0 : i32
    return %c0_i32, %c0_i32_0 : i32, i32
  }
  func.func @transform_2(%arg0: i32) -> (i32, i32) {
    %c0_i32 = arith.constant 0 : i32
    %c0_i32_0 = arith.constant 0 : i32
    %c0_i32_1 = arith.constant 0 : i32
    return %c0_i32, %c0_i32_0 : i32, i32
  }
  func.func @transform_3(%arg0: i32) -> (i32, i32) {
    %c0_i32 = arith.constant 0 : i32
    %c0_i32_0 = arith.constant 0 : i32
    %c0_i32_1 = arith.constant 0 : i32
    return %c0_i32, %c0_i32_0 : i32, i32
  }
  func.func @transform_4(%arg0: i32) -> (i32, i32) {
    %c0_i32 = arith.constant 0 : i32
    %c0_i32_0 = arith.constant 0 : i32
    %c0_i32_1 = arith.constant 0 : i32
    return %c0_i32, %c0_i32_0 : i32, i32
  }
  func.func @transform_5(%arg0: i32) -> (i32, i32) {
    %c0_i32 = arith.constant 0 : i32
    %c0_i32_0 = arith.constant 0 : i32
    return %arg0, %c0_i32 : i32, i32
  }
}

</mosaic_0001>

<bundles_post_ra>
// kernel: tpu_custom_call.1
= control target key start
LH: loop header
LB: loop body
LE: loop exit
PB: predicated region body
PF: predicated region fallthrough
CT: control target
= control target key end

     0   :  { %10 = vsyncpa [#allocation3], 0  ;;  %s750_s0 = inlined_call_operand.hbm [shape: f32[16,128], index: 0, kind: input, shape index: {}]   ;;  %s751_s1 = inlined_call_operand.hbm [shape: bf16[128,256], index: 1, kind: input, shape index: {}]   ;;  %s752_s2 = inlined_call_operand.vmem [shape: f32[1,256], index: 2, kind: input, shape index: {}]   ;;  %s753_s3 = inlined_call_operand.hbm [shape: bf16[256,128], index: 3, kind: input, shape index: {}]   ;;  %s754_s4 = inlined_call_operand.vmem [shape: f32[1,128], index: 4, kind: input, shape index: {}]   ;;  %s755_s5 = inlined_call_operand.hbm [shape: f32[16,128], index: 5, kind: output, shape index: {}]  }
   0x1   :  { %11 = vsyncpa [#allocation6], 0 }
   0x2   :  { %12 = vsyncpa [#allocation4], 0  ;;  %s641_s18 = smov [#allocation5]   ;;  %s642_s20 = smov [#allocation2]  }
   0x3   :  { %s30_s19 = sshll.u32 %s641_s18, 4  ;;  %s18_s21 = sshll.u32 %s642_s20, 4  ;;  %s31_s19 = int_to_ptr.vmem [resolvable:$true] %s30_s19  ;;  %s680_s21 = int_to_ptr.vmem [resolvable:$true] %s18_s21 }
   0x4   :  { %s547_s24 = scalar_lea.hbm %s751_s1, 2048 }
   0x5   :  { %p548_p0 = scmp.ne.s32.totalorder %s751_s1, %s547_s24  ;;  %p551_p1 = scmp.lt.u32.totalorder %s547_s24, %s751_s1 }
   0x7   :  { %p553_p2 = pnand %p551_p1, %p548_p0 }
   0x9   :  { %556 = shalt.err (!%p553_p2)
}
   0xa   :  { %s557_s29 = scalar_lea.vmem %s31_s19, 2048  ;;  %p562_p4 = scmp.lt.s32.totalorder %s31_s19, %s31_s19 }
   0xb   :  { %p558_p3 = scmp.ne.s32.totalorder %s31_s19, %s557_s29  ;;  %p563_p5 = scmp.lt.s32.totalorder %s557_s29, %s557_s29 }
   0xd   :  { %p564_p6 = por %p563_p5, %p562_p4 }
   0xf   :  { %p565_p7 = pnand %p564_p6, %p558_p3 }
  0x11   :  { %568 = shalt.err (!%p565_p7)
}
  0x12   :  { %s643_s30 = smov 128   ;;  %s644_s6 = smov 8  }
  0x13   :  { %36 = dma.hbm_to_vmem [thread:$0]  %s751_s1, 2048, %s31_s19, [#allocation6], %s643_s30, %s643_s30, %s644_s6  }
  0x14   :  { %s569_s11 = scalar_lea.hbm %s750_s0, 256 }
  0x15   :  { %p570_p8 = scmp.ne.s32.totalorder %s750_s0, %s569_s11  ;;  %p573_p9 = scmp.lt.u32.totalorder %s569_s11, %s750_s0 }
  0x17   :  { %p575_p10 = pnand %p573_p9, %p570_p8 }
  0x19   :  { %578 = shalt.err (!%p575_p10)
}
  0x1a   :  { %s579_s16 = scalar_lea.vmem %s680_s21, 256  ;;  %p584_p12 = scmp.lt.s32.totalorder %s680_s21, %s680_s21 }
  0x1b   :  { %p580_p11 = scmp.ne.s32.totalorder %s680_s21, %s579_s16  ;;  %p585_p13 = scmp.lt.s32.totalorder %s579_s16, %s579_s16 }
  0x1d   :  { %p586_p0 = por %p585_p13, %p584_p12 }
  0x1f   :  { %p587_p1 = pnand %p586_p0, %p580_p11 }
  0x21   :  { %590 = shalt.err (!%p587_p1)
}
  0x22   :  { %24 = dma.hbm_to_vmem [thread:$0]  %s750_s0, 256, %s680_s21, [#allocation3], %s643_s30, %s643_s30, %s644_s6  }
  0x23   :  { %s645_s18 = smov [#allocation7]   ;;  %s591_s23 = scalar_lea.hbm %s753_s3, 2048 }
  0x24   :  { %s44_s19 = sshll.u32 %s645_s18, 4  ;;  %p592_p2 = scmp.ne.s32.totalorder %s753_s3, %s591_s23  ;;  %s45_s19 = int_to_ptr.vmem [resolvable:$true] %s44_s19 }
  0x25   :  { %p595_p3 = scmp.lt.u32.totalorder %s591_s23, %s753_s3 }
  0x27   :  { %p597_p4 = pnand %p595_p3, %p592_p2 }
  0x29   :  { %600 = shalt.err (!%p597_p4)
}
  0x2a   :  { %s601_s28 = scalar_lea.vmem %s45_s19, 2048  ;;  %p606_p6 = scmp.lt.s32.totalorder %s45_s19, %s45_s19 }
  0x2b   :  { %p602_p5 = scmp.ne.s32.totalorder %s45_s19, %s601_s28  ;;  %p607_p7 = scmp.lt.s32.totalorder %s601_s28, %s601_s28 }
  0x2d   :  { %p608_p8 = por %p607_p7, %p606_p6 }
  0x2f   :  { %p609_p9 = pnand %p608_p8, %p602_p5 }
  0x31   :  { %612 = shalt.err (!%p609_p9)
}
  0x32   :  { %s646_s0 = smov 64   ;;  %s647_s21 = smov 4  }
  0x33   :  { %50 = dma.hbm_to_vmem [thread:$0]  %s753_s3, 2048, %s45_s19, [#allocation6], %s646_s0, %s646_s0, %s647_s21  }
  0x34   :  { %635 = dma.done.wait [#allocation3], 256  }
  0x35   :  { %636 = vsyncadd [#allocation3], 4294967040 }
  0x36   :  { %637 = dma.done.wait [#allocation6], 4096  }
  0x37   :  { %638 = vsyncadd [#allocation6], 4294963200  ;;  %v648_v0 = vmov 0   ;;  %v499_v1 = vld [vmem:[#allocation5 + $0x4] ss:$8 sps:$4 sm:$0xff]   ;;  %v63_v21 = vld [vmem:[#allocation2] sm:$0xff]  ;;  %v84_v36 = vlaneseq }
  0x38   :  { %206 = vmatprep.mubr.bf16.mxu0 %v648_v0  ;;  %v501_v2 = vld [vmem:[#allocation5] ss:$8 sps:$4 sm:$0xff]   ;;  %174 = vmatprep.subr.bf16.mxu0 %v499_v1  ;;  %v502_v3 = vld [vmem:[#allocation5 + $0x14] ss:$8 sps:$4 sm:$0xff]   ;;  %v504_v4 = vld [vmem:[#allocation5 + $0x10] ss:$8 sps:$4 sm:$0xff]  }
  0x39   :  { %175 = vmatpush1.bf16.msra.mxu0 %v501_v2  ;;  %v505_v5 = vld [vmem:[#allocation5 + $0x24] ss:$8 sps:$4 sm:$0xff]   ;;  %v507_v6 = vld [vmem:[#allocation5 + $0x20] ss:$8 sps:$4 sm:$0xff]   ;;  %v508_v7 = vld [vmem:[#allocation5 + $0x34] ss:$8 sps:$4 sm:$0xff]  }
  0x3a   :  { %176 = vmatprep.subr.bf16.mxu0 %v502_v3  ;;  %v510_v8 = vld [vmem:[#allocation5 + $0x30] ss:$8 sps:$4 sm:$0xff]   ;;  %v511_v9 = vld [vmem:[#allocation5 + $0x44] ss:$8 sps:$4 sm:$0xff]   ;;  %v513_v11 = vld [vmem:[#allocation5 + $0x40] ss:$8 sps:$4 sm:$0xff]  }
  0x3b   :  { %v523_v10 = vld [vmem:[#allocation7 + $0x40] sm:$0xff]   ;;  %v525_v13 = vld [vmem:[#allocation7 + $0x48] sm:$0xff]   ;;  %v514_v14 = vld [vmem:[#allocation5 + $0x54] ss:$8 sps:$4 sm:$0xff]   ;;  %v85_v37 = vshrl.u32 %v84_v36, 7  ;;  %s649_s10 = smov [#allocation8]  }
  0x3c   :  { %v524_v12 = vld [vmem:[#allocation7] sm:$0xff]   ;;  %468 = vmatprep.subr.bf16.mxu1 %v523_v10  ;;  %v526_v15 = vld [vmem:[#allocation7 + $0x8] sm:$0xff]   ;;  %v516_v16 = vld [vmem:[#allocation5 + $0x50] ss:$8 sps:$4 sm:$0xff]   ;;  %s422_s11 = sshll.u32 %s649_s10, 4  ;;  %s423_s11 = int_to_ptr.vmem [resolvable:$true] %s422_s11 }
  0x3d   :  { %177 = vmatpush1.bf16.msra.mxu0 %v504_v4  ;;  %469 = vmatpush3.bf16.msra.mxu1 %v524_v12  ;;  %v517_v17 = vld [vmem:[#allocation5 + $0x64] ss:$8 sps:$4 sm:$0xff]   ;;  %v519_v18 = vld [vmem:[#allocation5 + $0x60] ss:$8 sps:$4 sm:$0xff]   ;;  %v520_v19 = vld [vmem:[#allocation5 + $0x74] ss:$8 sps:$4 sm:$0xff]   ;;  %p618_p11 = scmp.lt.s32.totalorder %s423_s11, %s423_s11 }
  0x3e   :  { %178 = vmatprep.subr.bf16.mxu0 %v505_v5  ;;  %470 = vmatprep.subr.bf16.mxu1 %v525_v13  ;;  %v522_v20 = vld [vmem:[#allocation5 + $0x70] ss:$8 sps:$4 sm:$0xff]   ;;  %v531_v28 = vld [vmem:[#allocation7 + $0x60] sm:$0xff]   ;;  %v533_v30 = vld [vmem:[#allocation7 + $0x68] sm:$0xff]   ;;  %v86_v38 = vsub.s32 0, %v85_v37  ;;  %v90_v40 = vsub.s32 1, %v85_v37 }
  0x3f   :  { %v64_v22 = vld [vmem:[#allocation2 + $0x8] sm:$0xff]  ;;  %v527_v24 = vld [vmem:[#allocation7 + $0x50] sm:$0xff]   ;;  %v532_v29 = vld [vmem:[#allocation7 + $0x20] sm:$0xff]   ;;  %s613_s12 = scalar_lea.vmem %s423_s11, 256 }
  0x40   :  { %v65_v23 = vpack.c.bf16 %v64_v22, %v63_v21  ;;  %v528_v25 = vld [vmem:[#allocation7 + $0x10] sm:$0xff]   ;;  %v529_v26 = vld [vmem:[#allocation7 + $0x58] sm:$0xff]   ;;  %v534_v31 = vld [vmem:[#allocation7 + $0x28] sm:$0xff]   ;;  %p614_p10 = scmp.ne.s32.totalorder %s423_s11, %s613_s12  ;;  %p619_p12 = scmp.lt.s32.totalorder %s613_s12, %s613_s12 }
  0x41   :  { %179 = vmatpush1.bf16.msra.mxu0 %v507_v6  ;;  %471 = vmatpush3.bf16.msra.mxu1 %v526_v15  ;;  %v530_v27 = vld [vmem:[#allocation7 + $0x18] sm:$0xff]   ;;  %v535_v32 = vld [vmem:[#allocation7 + $0x70] sm:$0xff]  }
  0x42   :  { %180 = vmatprep.subr.bf16.mxu0 %v508_v7  ;;  %472 = vmatprep.subr.bf16.mxu1 %v527_v24  ;;  %v536_v33 = vld [vmem:[#allocation7 + $0x30] sm:$0xff]   ;;  %v537_v34 = vld [vmem:[#allocation7 + $0x78] sm:$0xff]   ;;  %p620_p13 = por %p619_p12, %p618_p11 }
  0x43   :  { %v538_v35 = vld [vmem:[#allocation7 + $0x38] sm:$0xff]   ;;  %v82_v39 = vld [vmem:[%s752_s2] sm:$0x3] }
  0x44   :  { %v87_v41 = vrot.slane %v82_v39, %v86_v38  ;;  %v91_v42 = vrot.slane %v82_v39, %v90_v40  ;;  %v451_v10 = vld [vmem:[%s754_s4] ss:$0 sm:$0xff]  ;;  %p621_p0 = pnand %p620_p13, %p614_p10 }
  0x45   :  { %181 = vmatpush1.bf16.msra.mxu0 %v510_v8  ;;  %473 = vmatpush3.bf16.msra.mxu1 %v528_v25 }
  0x46   :  { %182 = vmatprep.subr.bf16.mxu0 %v511_v9  ;;  %474 = vmatprep.subr.bf16.mxu1 %v529_v26 }
  0x49   :  { %183 = vmatpush1.bf16.msra.mxu0 %v513_v11  ;;  %475 = vmatpush3.bf16.msra.mxu1 %v530_v27 }
  0x4a   :  { %184 = vmatprep.subr.bf16.mxu0 %v514_v14  ;;  %476 = vmatprep.subr.bf16.mxu1 %v531_v28 }
  0x4d   :  { %185 = vmatpush1.bf16.msra.mxu0 %v516_v16  ;;  %477 = vmatpush3.bf16.msra.mxu1 %v532_v29 }
  0x4e   :  { %186 = vmatprep.subr.bf16.mxu0 %v517_v17  ;;  %478 = vmatprep.subr.bf16.mxu1 %v533_v30 }
  0x51   :  { %187 = vmatpush1.bf16.msra.mxu0 %v519_v18  ;;  %479 = vmatpush3.bf16.msra.mxu1 %v534_v31 }
  0x52   :  { %188 = vmatprep.subr.bf16.mxu0 %v520_v19  ;;  %480 = vmatprep.subr.bf16.mxu1 %v535_v32 }
  0x55   :  { %189 = vmatpush1.bf16.msra.mxu0 %v522_v20  ;;  %481 = vmatpush3.bf16.msra.mxu1 %v536_v33 }
  0x56   :  { %482 = vmatprep.subr.bf16.mxu1 %v537_v34 }
  0x58   :  { %207 = vmatmul.mubr.bf16.vlgmr.msra.gmra.mrb[0].mxu0 %v65_v23 }
  0x59   :  { %483 = vmatpush3.bf16.msra.mxu1 %v538_v35 }
 0x12b   :  { %v208_v43 = vpop.f32.mrb[0].mxu0 }
 0x12c   :  { %v209_v44 = vadd.f32 %v208_v43, %v87_v41  ;;  %v210_v45 = vpop.f32.mrb[1].mxu0 }
 0x12d   :  { %v211_v46 = vadd.f32 %v210_v45, %v91_v42  ;;  %v212_v47 = vpop.f32.mrb[2].mxu0 }
 0x12e   :  { %v221_v48 = vmul.f32 0.70710677, %v209_v44  ;;  %v213_v49 = vadd.f32 %v212_v47, %v87_v41  ;;  %v214_v50 = vpop.f32.mrb[3].mxu0  ;;  %v217_v61 = vmul.f32 0.5, %v209_v44 }
 0x12f   :  { %v222_v51 = vmul.f32 0.70710677, %v211_v46  ;;  %v215_v52 = vadd.f32 %v214_v50, %v91_v42  ;;  %v218_v0 = vmul.f32 0.5, %v211_v46 }
 0x130   :  { %539 = verf.f32 %v221_v48  ;;  %v223_v53 = vmul.f32 0.70710677, %v213_v49  ;;  %v219_v62 = vmul.f32 0.5, %v213_v49 }
 0x131   :  { %541 = verf.f32 %v222_v51  ;;  %v224_v54 = vmul.f32 0.70710677, %v215_v52  ;;  %v220_v1 = vmul.f32 0.5, %v215_v52 }
 0x132   :  { %543 = verf.f32 %v223_v53 }
 0x133   :  { %545 = verf.f32 %v224_v54 }
 0x13a   :  { %v540_v55 = vpop.eup %539 }
 0x13b   :  { %v542_v56 = vpop.eup %541  ;;  %v229_v57 = vadd.f32 1.0, %v540_v55 }
 0x13c   :  { %v544_v58 = vpop.eup %543  ;;  %v230_v59 = vadd.f32 1.0, %v542_v56 }
 0x13d   :  { %v546_v60 = vpop.eup %545  ;;  %v231_v63 = vadd.f32 1.0, %v544_v58  ;;  %v233_v3 = vmul.f32 %v229_v57, %v217_v61 }
 0x13e   :  { %v232_v2 = vadd.f32 1.0, %v546_v60  ;;  %v234_v5 = vmul.f32 %v230_v59, %v218_v0 }
 0x13f   :  { %v235_v4 = vmul.f32 %v231_v63, %v219_v62 }
 0x140   :  { %v236_v6 = vmul.f32 %v232_v2, %v220_v1 }
 0x141   :  { %v237_v7 = vpack.c.bf16 %v235_v4, %v233_v3 }
 0x142   :  { %v238_v8 = vpack.c.bf16 %v236_v6, %v234_v5 }
 0x144   :  { %406 = vmatprep.mubr.bf16.mxu1 %v238_v8 }
 0x145   :  { %407 = vmatmul.mubr.bf16.vlgmr.msra.gmra.mrb[0].mxu1 %v237_v7 }
 0x218   :  { %v484_v9 = vpop.f32.mrb[0].mxu1 }
 0x219   :  { %v485_v11 = vpop.f32.mrb[1].mxu1 }
 0x21a   :  { %v486_v12 = vadd.f32 %v485_v11, %v484_v9  ;;  %v487_v13 = vpop.f32.mrb[2].mxu1 }
 0x21b   :  { %v488_v14 = vpop.f32.mrb[3].mxu1 }
 0x21c   :  { %v409_v15 = vadd.f32 %v486_v12, %v451_v10  ;;  %v489_v16 = vadd.f32 %v488_v14, %v487_v13 }
 0x21e   :  { %415 = vst [vmem:[#allocation8] sm:$0xff] %v409_v15  ;;  %v412_v17 = vadd.f32 %v489_v16, %v451_v10 }
 0x220   :  { %416 = vst [vmem:[#allocation8 + $0x8] sm:$0xff] %v412_v17 }
 0x221   :  { %624 = shalt.err (!%p621_p0)
}
 0x222   :  { %s625_s14 = scalar_lea.hbm %s755_s5, 256 }
 0x223   :  { %p626_p1 = scmp.ne.s32.totalorder %s755_s5, %s625_s14  ;;  %p629_p2 = scmp.lt.u32.totalorder %s625_s14, %s755_s5 }
 0x225   :  { %p631_p3 = pnand %p629_p2, %p626_p1 }
 0x227   :  { %634 = shalt.err (!%p631_p3)
}
 0x228   :  { %428 = dma.vmem_to_hbm [thread:$0]  %s423_s11, 256, %s755_s5, [#allocation4], %s643_s30, %s643_s30, %s644_s6  }
 0x229   :  { %639 = dma.done.wait [#allocation4], 256  }
 0x22a   :  { %640 = vsyncadd [#allocation4], 4294967040 }
 0x22b   :  { %432 = vsyncpa [#allocation3], 1 }
 0x22c   :  { %433 = vsyncpa [#allocation6], 1 }
 0x22d   :  { %434 = vsyncpa [#allocation4], 1 }

</bundles_post_ra>
